<compile_context>
chip_gen: v5e
topology: v5e:2x2
jax: 0.10.0
libtpu: 0.0.40
codegen_flags: <defaults>
</compile_context>

<pallas_src>
import functools

import jax
import jax.numpy as jnp
from jax.experimental import pallas as pl
from jax.experimental.pallas import tpu as pltpu


# ----------------------------------------------------------------------------- kernel
def _tfcc_fused_kernel(x_ref, B_ref, P_ref, b_ref, g_ref, bt_ref, o_ref, xpad_ref, *, eps):
    # Ref shapes:
    #   x_ref    : (1, H, W*C)        lane-dense input sample
    #   B_ref    : (L, k, W*C, W*C)   banded conv weights (horizontal taps + Cin folded in)
    #   P_ref    : (W*C, W*C)         group-projection matrix (includes 1/n factor)
    #   b_ref    : (L, 1, W*C)        conv bias,   pre-broadcast to lanes
    #   g_ref    : (L, 1, W*C)        GN gamma,    pre-broadcast to lanes
    #   bt_ref   : (L, 1, W*C)        GN beta,     pre-broadcast to lanes
    #   o_ref    : (1, H, W*C)        output sample
    #   xpad_ref : (H + 2*pad, W*C)   VMEM scratch: H-padded activation
    _, H, WC = o_ref.shape
    L, k = B_ref.shape[0], B_ref.shape[1]
    p = k // 2

    # Zero once; only the interior rows are rewritten each layer, halo rows stay zero.
    xpad_ref[...] = jnp.zeros(xpad_ref.shape, jnp.float32)

    cur = x_ref[0]                                            # (H, WC)

    for li in range(L):                                       # static unroll over layers
        xpad_ref[p:p + H, :] = cur

        # ---- Conv: k banded matmuls, lane-dense (H, WC) output -------------
        acc = jnp.zeros((H, WC), jnp.float32)
        for dh in range(k):                                   # static unroll over vertical taps
            acc = acc + jnp.dot(
                xpad_ref[dh:dh + H, :], B_ref[li, dh],
                preferred_element_type=jnp.float32)
        acc = acc + b_ref[li]                                 # (1, WC) broadcast

        # ---- GroupNorm(4, C) via group-projection matmuls -------------------
        colsum = jnp.sum(acc, axis=0, keepdims=True)          # (1, WC)  sublane reduce
        mean_l = jnp.dot(colsum, P_ref[...],
                         preferred_element_type=jnp.float32)  # per-lane group mean
        d = acc - mean_l
        ss = jnp.sum(d * d, axis=0, keepdims=True)            # (1, WC)
        var_l = jnp.dot(ss, P_ref[...],
                        preferred_element_type=jnp.float32)   # per-lane group variance
        rstd = jax.lax.rsqrt(var_l + eps)

        # ---- affine + ReLU ---------------------------------------------------
        cur = jnp.maximum(d * rstd * g_ref[li] + bt_ref[li], 0.0)

    o_ref[...] = cur.reshape(1, H, WC)


# ----------------------------------------------------------------------------- wrapper helpers
def _band_weight(w_hwio, W_sp, C, k):
    """Fold horizontal taps + input channels into k banded (W*C, W*C) matrices.

    out_row[h] = sum_dh  xpadH_row[h+dh] @ B[dh]   reproduces SAME-padded conv.
    """
    p = k // 2
    WC = W_sp * C
    lane = jnp.arange(WC)
    src_w, src_c = lane // C, lane % C            # row index -> (source w', ci)
    dst_w, dst_c = lane // C, lane % C            # col index -> (dest   w , co)
    dw = src_w[:, None] - dst_w[None, :] + p      # (WC, WC)
    valid = (dw >= 0) & (dw < k)
    dw_c = jnp.clip(dw, 0, k - 1)
    ci = jnp.broadcast_to(src_c[:, None], (WC, WC))
    co = jnp.broadcast_to(dst_c[None, :], (WC, WC))

    def one(dh):
        vals = w_hwio[dh][dw_c, ci, co]           # gather from (k, Cin, Cout)
        return jnp.where(valid, vals, 0.0)

    return jnp.stack([one(dh) for dh in range(k)], axis=0)    # (k, WC, WC)


@functools.partial(jax.jit, static_argnames=("k", "groups", "eps"))
def tfcc_forward(x_nchw, params, *, k, groups=4, eps=1e-5):
    """TFCC forward. x_nchw: (N, C, H, W). params: list of (w_OIHW, b, gamma, beta)."""
    N, C, H, W_sp = x_nchw.shape
    L = len(params)
    WC = W_sp * C
    Hp = H + 2 * (k // 2)

    # ---- wrapper-side layout plumbing (tiny, once per call) ------------------
    x = jnp.transpose(x_nchw, (0, 2, 3, 1)).reshape(N, H, WC)   # NCHW -> (N, H, W*C)

    B_list, b_list, g_list, bt_list = [], [], [], []
    for (w_oihw, b, gamma, beta) in params:
        w_hwio = jnp.transpose(w_oihw.astype(jnp.float32), (2, 3, 1, 0))  # OIHW -> HWIO
        B_list.append(_band_weight(w_hwio, W_sp, C, k))
        b_list.append(jnp.tile(b, W_sp))
        g_list.append(jnp.tile(gamma, W_sp))
        bt_list.append(jnp.tile(beta, W_sp))
    B_all = jnp.stack(B_list, 0)                                # (L, k, WC, WC)
    b_all = jnp.stack(b_list, 0).reshape(L, 1, WC)
    g_all = jnp.stack(g_list, 0).reshape(L, 1, WC)
    bt_all = jnp.stack(bt_list, 0).reshape(L, 1, WC)

    cg = C // groups
    lane_grp = (jnp.arange(WC) % C) // cg
    P = (lane_grp[:, None] == lane_grp[None, :]).astype(jnp.float32)
    P = P / float(H * W_sp * cg)                                # (WC, WC), includes 1/n

    kernel = functools.partial(_tfcc_fused_kernel, eps=eps)

    out = pl.pallas_call(
        kernel,
        out_shape=jax.ShapeDtypeStruct((N, H, WC), jnp.float32),
        grid=(N,),
        in_specs=[
            pl.BlockSpec((1, H, WC), lambda n: (n, 0, 0)),
            pl.BlockSpec((L, k, WC, WC), lambda n: (0, 0, 0, 0)),
            pl.BlockSpec((WC, WC), lambda n: (0, 0)),
            pl.BlockSpec((L, 1, WC), lambda n: (0, 0, 0)),
            pl.BlockSpec((L, 1, WC), lambda n: (0, 0, 0)),
            pl.BlockSpec((L, 1, WC), lambda n: (0, 0, 0)),
        ],
        out_specs=pl.BlockSpec((1, H, WC), lambda n: (n, 0, 0)),
        scratch_shapes=[pltpu.VMEM((Hp, WC), jnp.float32)],
        compiler_params=pltpu.CompilerParams(dimension_semantics=("parallel",)),
    )(x, B_all, P, b_all, g_all, bt_all)

    return jnp.transpose(out.reshape(N, H, W_sp, C), (0, 3, 1, 2))   # -> NCHW


# ----------------------------------------------------------------------------- pure-JAX reference
def _reference_forward(x_nchw, params, *, k, groups=4, eps=1e-5):
    x = jnp.transpose(x_nchw, (0, 2, 3, 1))
    for (w_oihw, b, gamma, beta) in params:
        w = jnp.transpose(w_oihw, (2, 3, 1, 0))                 # OIHW -> HWIO
        y = jax.lax.conv_general_dilated(
            x, w, window_strides=(1, 1), padding="SAME",
            dimension_numbers=("NHWC", "HWIO", "NHWC")) + b
        N, H, W, C = y.shape
        yg = y.reshape(N, H, W, groups, C // groups)
        mean = jnp.mean(yg, axis=(1, 2, 4), keepdims=True)
        var = jnp.mean((yg - mean) ** 2, axis=(1, 2, 4), keepdims=True)
        yg = (yg - mean) * jax.lax.rsqrt(var + eps)
        y = yg.reshape(N, H, W, C) * gamma + beta
        x = jnp.maximum(y, 0.0)
    return jnp.transpose(x, (0, 3, 1, 2))


if __name__ == "__main__":
    # TFCC(c=8, l=2, k=3) on input (N, C, H, W) = (2, 8, 16, 16)  -> W*C = 128 (lane-dense)
    N, C, H, W = 2, 8, 16, 16
    K, L = 3, 2

    key = jax.random.PRNGKey(0)
    key, xkey = jax.random.split(key)
    x = jax.random.normal(xkey, (N, C, H, W), jnp.float32)

    params = []
    for _ in range(L):
        key, wk, bk, gk, btk = jax.random.split(key, 5)
        w = 0.1 * jax.random.normal(wk, (C, C, K, K), jnp.float32)   # PyTorch OIHW layout
        b = 0.01 * jax.random.normal(bk, (C,), jnp.float32)
        gamma = 1.0 + 0.1 * jax.random.normal(gk, (C,), jnp.float32)
        beta = 0.05 * jax.random.normal(btk, (C,), jnp.float32)
        params.append((w, b, gamma, beta))

    out = jax.block_until_ready(tfcc_forward(x, params, k=K))
    ref = jax.block_until_ready(_reference_forward(x, params, k=K))

    assert out.shape == (N, C, H, W)
    assert jnp.allclose(out, ref, atol=2e-3, rtol=2e-3), "mismatch vs JAX reference"

    print("KERNEL_OK")
</pallas_src>

<mosaic_0001>
module attributes {stable_mosaic.version = 11 : i64} {
  func.func @_tfcc_fused_kernel(%arg0: i32, %arg1: memref<1x16x128xf32, #tpu.memory_space<vmem>>, %arg2: memref<2x3x128x128xf32, #tpu.memory_space<vmem>>, %arg3: memref<128x128xf32, #tpu.memory_space<vmem>>, %arg4: memref<2x1x128xf32, #tpu.memory_space<vmem>>, %arg5: memref<2x1x128xf32, #tpu.memory_space<vmem>>, %arg6: memref<2x1x128xf32, #tpu.memory_space<vmem>>, %arg7: memref<1x16x128xf32, #tpu.memory_space<vmem>>, %arg8: memref<18x128xf32, #tpu.memory_space<vmem>>) attributes {dimension_semantics = [#tpu.dimension_semantics<parallel>], iteration_bounds = array<i64: 2>, scalar_prefetch = 0 : i64, scratch_operands = 1 : i64, tpu.core_type = #tpu.core_type<tc>, window_params = [{transform_indices = @transform_0, window_bounds = array<i64: 1, 16, 128>}, {pipeline_mode = #tpu.pipeline_mode<synchronous>, transform_indices = @transform_1, window_bounds = array<i64: 2, 3, 128, 128>}, {pipeline_mode = #tpu.pipeline_mode<synchronous>, transform_indices = @transform_2, window_bounds = array<i64: 128, 128>}, {pipeline_mode = #tpu.pipeline_mode<synchronous>, transform_indices = @transform_3, window_bounds = array<i64: 2, 1, 128>}, {pipeline_mode = #tpu.pipeline_mode<synchronous>, transform_indices = @transform_4, window_bounds = array<i64: 2, 1, 128>}, {pipeline_mode = #tpu.pipeline_mode<synchronous>, transform_indices = @transform_5, window_bounds = array<i64: 2, 1, 128>}, {transform_indices = @transform_6, window_bounds = array<i64: 1, 16, 128>}]} {
    %cst = arith.constant 0.000000e+00 : f32
    %0 = vector.broadcast %cst : f32 to vector<18x128xf32>
    %c0 = arith.constant 0 : index
    %c0_0 = arith.constant 0 : index
    %1 = vector.load %arg8[%c0, %c0_0] : memref<18x128xf32, #tpu.memory_space<vmem>>, vector<18x128xf32>
    tpu.vector_store %arg8[%c0, %c0_0], %0 {strides = array<i32>} : memref<18x128xf32, #tpu.memory_space<vmem>>, vector<18x128xf32>,
    %c0_1 = arith.constant 0 : index
    %c0_2 = arith.constant 0 : index
    %c0_3 = arith.constant 0 : index
    %2 = vector.load %arg1[%c0_1, %c0_2, %c0_3] : memref<1x16x128xf32, #tpu.memory_space<vmem>>, vector<1x16x128xf32>
    %3 = vector.shape_cast %2 : vector<1x16x128xf32> to vector<16x128xf32>
    %c1 = arith.constant 1 : index
    %c0_4 = arith.constant 0 : index
    %4 = vector.load %arg8[%c1, %c0_4] : memref<18x128xf32, #tpu.memory_space<vmem>>, vector<16x128xf32>
    tpu.vector_store %arg8[%c1, %c0_4], %3 {strides = array<i32>} : memref<18x128xf32, #tpu.memory_space<vmem>>, vector<16x128xf32>,
    %cst_5 = arith.constant 0.000000e+00 : f32
    %5 = vector.broadcast %cst_5 : f32 to vector<16x128xf32>
    %c0_6 = arith.constant 0 : index
    %c0_7 = arith.constant 0 : index
    %6 = vector.load %arg8[%c0_6, %c0_7] : memref<18x128xf32, #tpu.memory_space<vmem>>, vector<16x128xf32>
    %c0_8 = arith.constant 0 : index
    %c0_9 = arith.constant 0 : index
    %c0_10 = arith.constant 0 : index
    %c0_11 = arith.constant 0 : index
    %7 = vector.load %arg2[%c0_8, %c0_9, %c0_10, %c0_11] : memref<2x3x128x128xf32, #tpu.memory_space<vmem>>, vector<1x1x128x128xf32>
    %8 = vector.shape_cast %7 : vector<1x1x128x128xf32> to vector<128x128xf32>
    %cst_12 = arith.constant dense<0.000000e+00> : vector<16x128xf32>
    %9 = tpu.matmul %6, %8, %cst_12 {dimension_numbers = #tpu.dot_dimension_numbers<[1], [0], [0], [1], [0, 0, 1, 1], [], []>} : vector<16x128xf32>, vector<128x128xf32>, vector<16x128xf32> -> vector<16x128xf32>
    %10 = arith.addf %5, %9 : vector<16x128xf32>
    %c1_13 = arith.constant 1 : index
    %c0_14 = arith.constant 0 : index
    %11 = vector.load %arg8[%c1_13, %c0_14] : memref<18x128xf32, #tpu.memory_space<vmem>>, vector<16x128xf32>
    %c0_15 = arith.constant 0 : index
    %c1_16 = arith.constant 1 : index
    %c0_17 = arith.constant 0 : index
    %c0_18 = arith.constant 0 : index
    %12 = vector.load %arg2[%c0_15, %c1_16, %c0_17, %c0_18] : memref<2x3x128x128xf32, #tpu.memory_space<vmem>>, vector<1x1x128x128xf32>
    %13 = vector.shape_cast %12 : vector<1x1x128x128xf32> to vector<128x128xf32>
    %cst_19 = arith.constant dense<0.000000e+00> : vector<16x128xf32>
    %14 = tpu.matmul %11, %13, %cst_19 {dimension_numbers = #tpu.dot_dimension_numbers<[1], [0], [0], [1], [0, 0, 1, 1], [], []>} : vector<16x128xf32>, vector<128x128xf32>, vector<16x128xf32> -> vector<16x128xf32>
    %15 = arith.addf %10, %14 : vector<16x128xf32>
    %c2 = arith.constant 2 : index
    %c0_20 = arith.constant 0 : index
    %16 = vector.load %arg8[%c2, %c0_20] : memref<18x128xf32, #tpu.memory_space<vmem>>, vector<16x128xf32>
    %c0_21 = arith.constant 0 : index
    %c2_22 = arith.constant 2 : index
    %c0_23 = arith.constant 0 : index
    %c0_24 = arith.constant 0 : index
    %17 = vector.load %arg2[%c0_21, %c2_22, %c0_23, %c0_24] : memref<2x3x128x128xf32, #tpu.memory_space<vmem>>, vector<1x1x128x128xf32>
    %18 = vector.shape_cast %17 : vector<1x1x128x128xf32> to vector<128x128xf32>
    %cst_25 = arith.constant dense<0.000000e+00> : vector<16x128xf32>
    %19 = tpu.matmul %16, %18, %cst_25 {dimension_numbers = #tpu.dot_dimension_numbers<[1], [0], [0], [1], [0, 0, 1, 1], [], []>} : vector<16x128xf32>, vector<128x128xf32>, vector<16x128xf32> -> vector<16x128xf32>
    %20 = arith.addf %15, %19 : vector<16x128xf32>
    %c0_26 = arith.constant 0 : index
    %c0_27 = arith.constant 0 : index
    %c0_28 = arith.constant 0 : index
    %21 = vector.load %arg4[%c0_26, %c0_27, %c0_28] : memref<2x1x128xf32, #tpu.memory_space<vmem>>, vector<1x1x128xf32>
    %22 = vector.shape_cast %21 : vector<1x1x128xf32> to vector<1x128xf32>
    %23 = vector.broadcast %22 : vector<1x128xf32> to vector<16x128xf32>
    %24 = arith.addf %20, %23 : vector<16x128xf32>
    %cst_29 = arith.constant dense<0.000000e+00> : vector<128xf32>
    %25 = vector.multi_reduction <add>, %24, %cst_29 [0] : vector<16x128xf32> to vector<128xf32>
    %26 = vector.shape_cast %25 : vector<128xf32> to vector<1x128xf32>
    %c0_30 = arith.constant 0 : index
    %c0_31 = arith.constant 0 : index
    %27 = vector.load %arg3[%c0_30, %c0_31] : memref<128x128xf32, #tpu.memory_space<vmem>>, vector<128x128xf32>
    %cst_32 = arith.constant dense<0.000000e+00> : vector<1x128xf32>
    %28 = tpu.matmul %26, %27, %cst_32 {dimension_numbers = #tpu.dot_dimension_numbers<[1], [0], [0], [1], [0, 0, 1, 1], [], []>} : vector<1x128xf32>, vector<128x128xf32>, vector<1x128xf32> -> vector<1x128xf32>
    %29 = vector.broadcast %28 : vector<1x128xf32> to vector<16x128xf32>
    %30 = arith.subf %24, %29 : vector<16x128xf32>
    %31 = arith.mulf %30, %30 : vector<16x128xf32>
    %cst_33 = arith.constant dense<0.000000e+00> : vector<128xf32>
    %32 = vector.multi_reduction <add>, %31, %cst_33 [0] : vector<16x128xf32> to vector<128xf32>
    %33 = vector.shape_cast %32 : vector<128xf32> to vector<1x128xf32>
    %c0_34 = arith.constant 0 : index
    %c0_35 = arith.constant 0 : index
    %34 = vector.load %arg3[%c0_34, %c0_35] : memref<128x128xf32, #tpu.memory_space<vmem>>, vector<128x128xf32>
    %cst_36 = arith.constant dense<0.000000e+00> : vector<1x128xf32>
    %35 = tpu.matmul %33, %34, %cst_36 {dimension_numbers = #tpu.dot_dimension_numbers<[1], [0], [0], [1], [0, 0, 1, 1], [], []>} : vector<1x128xf32>, vector<128x128xf32>, vector<1x128xf32> -> vector<1x128xf32>
    %cst_37 = arith.constant 9.99999974E-6 : f32
    %36 = vector.broadcast %cst_37 : f32 to vector<1x128xf32>
    %37 = arith.addf %35, %36 : vector<1x128xf32>
    %38 = math.rsqrt %37 : vector<1x128xf32>
    %39 = vector.broadcast %38 : vector<1x128xf32> to vector<16x128xf32>
    %40 = arith.mulf %30, %39 : vector<16x128xf32>
    %c0_38 = arith.constant 0 : index
    %c0_39 = arith.constant 0 : index
    %c0_40 = arith.constant 0 : index
    %41 = vector.load %arg5[%c0_38, %c0_39, %c0_40] : memref<2x1x128xf32, #tpu.memory_space<vmem>>, vector<1x1x128xf32>
    %42 = vector.shape_cast %41 : vector<1x1x128xf32> to vector<1x128xf32>
    %43 = vector.broadcast %42 : vector<1x128xf32> to vector<16x128xf32>
    %44 = arith.mulf %40, %43 : vector<16x128xf32>
    %c0_41 = arith.constant 0 : index
    %c0_42 = arith.constant 0 : index
    %c0_43 = arith.constant 0 : index
    %45 = vector.load %arg6[%c0_41, %c0_42, %c0_43] : memref<2x1x128xf32, #tpu.memory_space<vmem>>, vector<1x1x128xf32>
    %46 = vector.shape_cast %45 : vector<1x1x128xf32> to vector<1x128xf32>
    %47 = vector.broadcast %46 : vector<1x128xf32> to vector<16x128xf32>
    %48 = arith.addf %44, %47 : vector<16x128xf32>
    %cst_44 = arith.constant 0.000000e+00 : f32
    %49 = vector.broadcast %cst_44 : f32 to vector<16x128xf32>
    %50 = arith.maximumf %48, %49 : vector<16x128xf32>
    %c1_45 = arith.constant 1 : index
    %c0_46 = arith.constant 0 : index
    %51 = vector.load %arg8[%c1_45, %c0_46] : memref<18x128xf32, #tpu.memory_space<vmem>>, vector<16x128xf32>
    tpu.vector_store %arg8[%c1_45, %c0_46], %50 {strides = array<i32>} : memref<18x128xf32, #tpu.memory_space<vmem>>, vector<16x128xf32>,
    %cst_47 = arith.constant 0.000000e+00 : f32
    %52 = vector.broadcast %cst_47 : f32 to vector<16x128xf32>
    %c0_48 = arith.constant 0 : index
    %c0_49 = arith.constant 0 : index
    %53 = vector.load %arg8[%c0_48, %c0_49] : memref<18x128xf32, #tpu.memory_space<vmem>>, vector<16x128xf32>
    %c1_50 = arith.constant 1 : index
    %c0_51 = arith.constant 0 : index
    %c0_52 = arith.constant 0 : index
    %c0_53 = arith.constant 0 : index
    %54 = vector.load %arg2[%c1_50, %c0_51, %c0_52, %c0_53] : memref<2x3x128x128xf32, #tpu.memory_space<vmem>>, vector<1x1x128x128xf32>
    %55 = vector.shape_cast %54 : vector<1x1x128x128xf32> to vector<128x128xf32>
    %cst_54 = arith.constant dense<0.000000e+00> : vector<16x128xf32>
    %56 = tpu.matmul %53, %55, %cst_54 {dimension_numbers = #tpu.dot_dimension_numbers<[1], [0], [0], [1], [0, 0, 1, 1], [], []>} : vector<16x128xf32>, vector<128x128xf32>, vector<16x128xf32> -> vector<16x128xf32>
    %57 = arith.addf %52, %56 : vector<16x128xf32>
    %c1_55 = arith.constant 1 : index
    %c0_56 = arith.constant 0 : index
    %58 = vector.load %arg8[%c1_55, %c0_56] : memref<18x128xf32, #tpu.memory_space<vmem>>, vector<16x128xf32>
    %c1_57 = arith.constant 1 : index
    %c1_58 = arith.constant 1 : index
    %c0_59 = arith.constant 0 : index
    %c0_60 = arith.constant 0 : index
    %59 = vector.load %arg2[%c1_57, %c1_58, %c0_59, %c0_60] : memref<2x3x128x128xf32, #tpu.memory_space<vmem>>, vector<1x1x128x128xf32>
    %60 = vector.shape_cast %59 : vector<1x1x128x128xf32> to vector<128x128xf32>
    %cst_61 = arith.constant dense<0.000000e+00> : vector<16x128xf32>
    %61 = tpu.matmul %58, %60, %cst_61 {dimension_numbers = #tpu.dot_dimension_numbers<[1], [0], [0], [1], [0, 0, 1, 1], [], []>} : vector<16x128xf32>, vector<128x128xf32>, vector<16x128xf32> -> vector<16x128xf32>
    %62 = arith.addf %57, %61 : vector<16x128xf32>
    %c2_62 = arith.constant 2 : index
    %c0_63 = arith.constant 0 : index
    %63 = vector.load %arg8[%c2_62, %c0_63] : memref<18x128xf32, #tpu.memory_space<vmem>>, vector<16x128xf32>
    %c1_64 = arith.constant 1 : index
    %c2_65 = arith.constant 2 : index
    %c0_66 = arith.constant 0 : index
    %c0_67 = arith.constant 0 : index
    %64 = vector.load %arg2[%c1_64, %c2_65, %c0_66, %c0_67] : memref<2x3x128x128xf32, #tpu.memory_space<vmem>>, vector<1x1x128x128xf32>
    %65 = vector.shape_cast %64 : vector<1x1x128x128xf32> to vector<128x128xf32>
    %cst_68 = arith.constant dense<0.000000e+00> : vector<16x128xf32>
    %66 = tpu.matmul %63, %65, %cst_68 {dimension_numbers = #tpu.dot_dimension_numbers<[1], [0], [0], [1], [0, 0, 1, 1], [], []>} : vector<16x128xf32>, vector<128x128xf32>, vector<16x128xf32> -> vector<16x128xf32>
    %67 = arith.addf %62, %66 : vector<16x128xf32>
    %c1_69 = arith.constant 1 : index
    %c0_70 = arith.constant 0 : index
    %c0_71 = arith.constant 0 : index
    %68 = vector.load %arg4[%c1_69, %c0_70, %c0_71] : memref<2x1x128xf32, #tpu.memory_space<vmem>>, vector<1x1x128xf32>
    %69 = vector.shape_cast %68 : vector<1x1x128xf32> to vector<1x128xf32>
    %70 = vector.broadcast %69 : vector<1x128xf32> to vector<16x128xf32>
    %71 = arith.addf %67, %70 : vector<16x128xf32>
    %cst_72 = arith.constant dense<0.000000e+00> : vector<128xf32>
    %72 = vector.multi_reduction <add>, %71, %cst_72 [0] : vector<16x128xf32> to vector<128xf32>
    %73 = vector.shape_cast %72 : vector<128xf32> to vector<1x128xf32>
    %c0_73 = arith.constant 0 : index
    %c0_74 = arith.constant 0 : index
    %74 = vector.load %arg3[%c0_73, %c0_74] : memref<128x128xf32, #tpu.memory_space<vmem>>, vector<128x128xf32>
    %cst_75 = arith.constant dense<0.000000e+00> : vector<1x128xf32>
    %75 = tpu.matmul %73, %74, %cst_75 {dimension_numbers = #tpu.dot_dimension_numbers<[1], [0], [0], [1], [0, 0, 1, 1], [], []>} : vector<1x128xf32>, vector<128x128xf32>, vector<1x128xf32> -> vector<1x128xf32>
    %76 = vector.broadcast %75 : vector<1x128xf32> to vector<16x128xf32>
    %77 = arith.subf %71, %76 : vector<16x128xf32>
    %78 = arith.mulf %77, %77 : vector<16x128xf32>
    %cst_76 = arith.constant dense<0.000000e+00> : vector<128xf32>
    %79 = vector.multi_reduction <add>, %78, %cst_76 [0] : vector<16x128xf32> to vector<128xf32>
    %80 = vector.shape_cast %79 : vector<128xf32> to vector<1x128xf32>
    %c0_77 = arith.constant 0 : index
    %c0_78 = arith.constant 0 : index
    %81 = vector.load %arg3[%c0_77, %c0_78] : memref<128x128xf32, #tpu.memory_space<vmem>>, vector<128x128xf32>
    %cst_79 = arith.constant dense<0.000000e+00> : vector<1x128xf32>
    %82 = tpu.matmul %80, %81, %cst_79 {dimension_numbers = #tpu.dot_dimension_numbers<[1], [0], [0], [1], [0, 0, 1, 1], [], []>} : vector<1x128xf32>, vector<128x128xf32>, vector<1x128xf32> -> vector<1x128xf32>
    %cst_80 = arith.constant 9.99999974E-6 : f32
    %83 = vector.broadcast %cst_80 : f32 to vector<1x128xf32>
    %84 = arith.addf %82, %83 : vector<1x128xf32>
    %85 = math.rsqrt %84 : vector<1x128xf32>
    %86 = vector.broadcast %85 : vector<1x128xf32> to vector<16x128xf32>
    %87 = arith.mulf %77, %86 : vector<16x128xf32>
    %c1_81 = arith.constant 1 : index
    %c0_82 = arith.constant 0 : index
    %c0_83 = arith.constant 0 : index
    %88 = vector.load %arg5[%c1_81, %c0_82, %c0_83] : memref<2x1x128xf32, #tpu.memory_space<vmem>>, vector<1x1x128xf32>
    %89 = vector.shape_cast %88 : vector<1x1x128xf32> to vector<1x128xf32>
    %90 = vector.broadcast %89 : vector<1x128xf32> to vector<16x128xf32>
    %91 = arith.mulf %87, %90 : vector<16x128xf32>
    %c1_84 = arith.constant 1 : index
    %c0_85 = arith.constant 0 : index
    %c0_86 = arith.constant 0 : index
    %92 = vector.load %arg6[%c1_84, %c0_85, %c0_86] : memref<2x1x128xf32, #tpu.memory_space<vmem>>, vector<1x1x128xf32>
    %93 = vector.shape_cast %92 : vector<1x1x128xf32> to vector<1x128xf32>
    %94 = vector.broadcast %93 : vector<1x128xf32> to vector<16x128xf32>
    %95 = arith.addf %91, %94 : vector<16x128xf32>
    %cst_87 = arith.constant 0.000000e+00 : f32
    %96 = vector.broadcast %cst_87 : f32 to vector<16x128xf32>
    %97 = arith.maximumf %95, %96 : vector<16x128xf32>
    %98 = vector.shape_cast %97 : vector<16x128xf32> to vector<1x16x128xf32>
    %c0_88 = arith.constant 0 : index
    %c0_89 = arith.constant 0 : index
    %c0_90 = arith.constant 0 : index
    %99 = vector.load %arg7[%c0_88, %c0_89, %c0_90] : memref<1x16x128xf32, #tpu.memory_space<vmem>>, vector<1x16x128xf32>
    tpu.vector_store %arg7[%c0_88, %c0_89, %c0_90], %98 {strides = array<i32>} : memref<1x16x128xf32, #tpu.memory_space<vmem>>, vector<1x16x128xf32>,
    return
  }
  func.func @transform_0(%arg0: i32) -> (i32, i32, i32) {
    %c0_i32 = arith.constant 0 : i32
    %c0_i32_0 = arith.constant 0 : i32
    %c0_i32_1 = arith.constant 0 : i32
    return %arg0, %c0_i32, %c0_i32_0 : i32, i32, i32
  }
  func.func @transform_1(%arg0: i32) -> (i32, i32, i32, i32) {
    %c0_i32 = arith.constant 0 : i32
    %c0_i32_0 = arith.constant 0 : i32
    %c0_i32_1 = arith.constant 0 : i32
    %c0_i32_2 = arith.constant 0 : i32
    %c0_i32_3 = arith.constant 0 : i32
    return %c0_i32, %c0_i32_0, %c0_i32_1, %c0_i32_2 : i32, i32, i32, i32
  }
  func.func @transform_2(%arg0: i32) -> (i32, i32) {
    %c0_i32 = arith.constant 0 : i32
    %c0_i32_0 = arith.constant 0 : i32
    %c0_i32_1 = arith.constant 0 : i32
    return %c0_i32, %c0_i32_0 : i32, i32
  }
  func.func @transform_3(%arg0: i32) -> (i32, i32, i32) {
    %c0_i32 = arith.constant 0 : i32
    %c0_i32_0 = arith.constant 0 : i32
    %c0_i32_1 = arith.constant 0 : i32
    %c0_i32_2 = arith.constant 0 : i32
    return %c0_i32, %c0_i32_0, %c0_i32_1 : i32, i32, i32
  }
  func.func @transform_4(%arg0: i32) -> (i32, i32, i32) {
    %c0_i32 = arith.constant 0 : i32
    %c0_i32_0 = arith.constant 0 : i32
    %c0_i32_1 = arith.constant 0 : i32
    %c0_i32_2 = arith.constant 0 : i32
    return %c0_i32, %c0_i32_0, %c0_i32_1 : i32, i32, i32
  }
  func.func @transform_5(%arg0: i32) -> (i32, i32, i32) {
    %c0_i32 = arith.constant 0 : i32
    %c0_i32_0 = arith.constant 0 : i32
    %c0_i32_1 = arith.constant 0 : i32
    %c0_i32_2 = arith.constant 0 : i32
    return %c0_i32, %c0_i32_0, %c0_i32_1 : i32, i32, i32
  }
  func.func @transform_6(%arg0: i32) -> (i32, i32, i32) {
    %c0_i32 = arith.constant 0 : i32
    %c0_i32_0 = arith.constant 0 : i32
    %c0_i32_1 = arith.constant 0 : i32
    return %arg0, %c0_i32, %c0_i32_0 : i32, i32, i32
  }
}

</mosaic_0001>

<bundles_post_ra>
// kernel: tile.33
= control target key start
LH: loop header
LB: loop body
LE: loop exit
PB: predicated region body
PF: predicated region fallthrough
CT: control target
= control target key end

     0   :  { %s28_s0 = inlined_call_operand.vmem [shape: f32[8], index: 0, kind: input, shape index: {}]   ;;  %s29_s1 = inlined_call_operand.vmem [shape: f32[16,8], index: 1, kind: output, shape index: {}]  }
   0x1   :  { %v4_v0 = vld [vmem:[%s28_s0] ss:$0 sm:$0xff] }
   0x2   :  { %5 = vst [vmem:[%s29_s1] sm:$0xff] %v4_v0 }
   0x3   :  { %8 = vst [vmem:[%s29_s1 + $0x8] sm:$0xff] %v4_v0 }

// kernel: tile.54
= control target key start
LH: loop header
LB: loop body
LE: loop exit
PB: predicated region body
PF: predicated region fallthrough
CT: control target
= control target key end

     0   :  { %s131_s10 = smov 120   ;;  %s132_s11 = smov 104   ;;  %vm3_vm0 = vcmask 64512   ;;  %vm9_vm1 = vcmask 1048512   ;;  %vm15_vm2 = vcmask 982912   ;;  %vm21_vm3 = vcmask 917312   ;;  %s207_s0 = inlined_call_operand.vmem [shape: f32[16,8], index: 0, kind: input, shape index: {}]   ;;  %s208_s1 = inlined_call_operand.vmem [shape: f32[1,128], index: 1, kind: output, shape index: {}]  }
   0x1   :  { %v101_v0 = vld [vmem:[%s207_s0 + $0xf] sm:$0x1]   ;;  %v103_v1 = vld [vmem:[%s207_s0 + $0xd] sm:$0x1]   ;;  %v105_v2 = vld [vmem:[%s207_s0 + $0xb] sm:$0x1]  }
   0x2   :  { %7 = vrot.lane.b32.xlu0 %v101_v0, %s131_s10  ;;  %19 = vrot.lane.b32.xlu1 %v103_v1, %s132_s11  ;;  %s133_s14 = smov 88   ;;  %v102_v3 = vld [vmem:[%s207_s0 + $0xe] sm:$0x1]   ;;  %v104_v4 = vld [vmem:[%s207_s0 + $0xc] sm:$0x1]   ;;  %s134_s19 = smov 112  }
   0x3   :  { %31 = vrot.lane.b32.xlu2 %v105_v2, %s133_s14  ;;  %s135_s20 = smov 96   ;;  %v106_v5 = vld [vmem:[%s207_s0 + $0xa] sm:$0x1]   ;;  %s136_s23 = smov 80   ;;  %v107_v6 = vld [vmem:[%s207_s0 + $0x9] sm:$0x1]  }
   0x4   :  { %v108_v7 = vld [vmem:[%s207_s0 + $0x8] sm:$0x1]   ;;  %s137_s28 = smov 72   ;;  %s138_s29 = smov 64   ;;  %v109_v8 = vld [vmem:[%s207_s0 + $0x7] sm:$0x1]  }
   0x5   :  { %s139_s3 = smov 56   ;;  %v110_v9 = vld [vmem:[%s207_s0 + $0x6] sm:$0x1]   ;;  %v111_v10 = vld [vmem:[%s207_s0 + $0x5] sm:$0x1]   ;;  %s140_s8 = smov 48  }
   0x6   :  { %s141_s9 = smov 40   ;;  %v112_v11 = vld [vmem:[%s207_s0 + $0x4] sm:$0x1]   ;;  %s142_s12 = smov 32   ;;  %v113_v12 = vld [vmem:[%s207_s0 + $0x3] sm:$0x1]  }
   0x7   :  { %v114_v13 = vld [vmem:[%s207_s0 + $0x2] sm:$0x1]   ;;  %s143_s17 = smov 24   ;;  %s144_s18 = smov 16   ;;  %v115_v14 = vld [vmem:[%s207_s0 + $0x1] sm:$0x1]  }
   0x8   :  { %s145_s21 = smov 8   ;;  %v2_v15 = vld [vmem:[%s207_s0] sm:$0x1]   ;;  %vm27_vm4 = vcmask 851712   ;;  %vm33_vm5 = vcmask 786112   ;;  %vm39_vm6 = vcmask 720512  }
   0x9   :  { %4 = vst.msk [vmem:[#allocation0] sm:$0x1] %vm3_vm0, %v2_v15   ;;  %vm45_vm7 = vcmask 654912   ;;  %vm51_vm8 = vcmask 589312   ;;  %vm57_vm9 = vcmask 523712   ;;  %vm63_vm10 = vcmask 458112  }
   0xa   :  { %13 = vrot.lane.b32.xlu0 %v102_v3, %s134_s19  ;;  %25 = vrot.lane.b32.xlu1 %v104_v4, %s135_s20  ;;  %vm69_vm11 = vcmask 392512   ;;  %vm75_vm12 = vcmask 326912   ;;  %vm81_vm13 = vcmask 261312   ;;  %vm87_vm14 = vcmask 195712  }
   0xb   :  { %37 = vrot.lane.b32.xlu2 %v106_v5, %s136_s23  ;;  %vm93_vm15 = vcmask 130112  }
  0x12   :  { %43 = vrot.lane.b32.xlu0 %v107_v6, %s137_s28  ;;  %49 = vrot.lane.b32.xlu1 %v108_v7, %s138_s29 }
  0x13   :  { %55 = vrot.lane.b32.xlu2 %v109_v8, %s139_s3 }
  0x1a   :  { %61 = vrot.lane.b32.xlu0 %v110_v9, %s140_s8  ;;  %67 = vrot.lane.b32.xlu1 %v111_v10, %s141_s9 }
  0x1b   :  { %73 = vrot.lane.b32.xlu2 %v112_v11, %s142_s12 }
  0x22   :  { %79 = vrot.lane.b32.xlu0 %v113_v12, %s143_s17  ;;  %85 = vrot.lane.b32.xlu1 %v114_v13, %s144_s18 }
  0x23   :  { %91 = vrot.lane.b32.xlu2 %v115_v14, %s145_s21 }
  0x5d   :  { %v32_v16 = vpop.permute.xlu2 %31  }
  0x65   :  { %v38_v17 = vpop.permute.xlu2 %37  }
  0x6d   :  { %v56_v18 = vpop.permute.xlu2 %55  }
  0x74   :  { %v8_v19 = vpop.permute.xlu0 %7   ;;  %v20_v20 = vpop.permute.xlu1 %19  }
  0x75   :  { %10 = vst.msk [vmem:[#allocation0] sm:$0x1] %vm9_vm1, %v8_v19   ;;  %v74_v21 = vpop.permute.xlu2 %73  }
  0x7c   :  { %v14_v22 = vpop.permute.xlu0 %13   ;;  %v26_v23 = vpop.permute.xlu1 %25  }
  0x7d   :  { %16 = vst.msk [vmem:[#allocation0] sm:$0x1] %vm15_vm2, %v14_v22   ;;  %v92_v24 = vpop.permute.xlu2 %91  }
  0x7e   :  { %22 = vst.msk [vmem:[#allocation0] sm:$0x1] %vm21_vm3, %v20_v20  }
  0x7f   :  { %28 = vst.msk [vmem:[#allocation0] sm:$0x1] %vm27_vm4, %v26_v23  }
  0x80   :  { %34 = vst.msk [vmem:[#allocation0] sm:$0x1] %vm33_vm5, %v32_v16  }
  0x81   :  { %40 = vst.msk [vmem:[#allocation0] sm:$0x1] %vm39_vm6, %v38_v17  }
  0x84   :  { %v44_v25 = vpop.permute.xlu0 %43   ;;  %v50_v26 = vpop.permute.xlu1 %49  }
  0x85   :  { %46 = vst.msk [vmem:[#allocation0] sm:$0x1] %vm45_vm7, %v44_v25  }
  0x86   :  { %52 = vst.msk [vmem:[#allocation0] sm:$0x1] %vm51_vm8, %v50_v26  }
  0x87   :  { %58 = vst.msk [vmem:[#allocation0] sm:$0x1] %vm57_vm9, %v56_v18  }
  0x8c   :  { %v62_v27 = vpop.permute.xlu0 %61   ;;  %v68_v28 = vpop.permute.xlu1 %67  }
  0x8d   :  { %64 = vst.msk [vmem:[#allocation0] sm:$0x1] %vm63_vm10, %v62_v27  }
  0x8e   :  { %70 = vst.msk [vmem:[#allocation0] sm:$0x1] %vm69_vm11, %v68_v28  }
  0x8f   :  { %76 = vst.msk [vmem:[#allocation0] sm:$0x1] %vm75_vm12, %v74_v21  }
  0x94   :  { %v80_v29 = vpop.permute.xlu0 %79   ;;  %v86_v30 = vpop.permute.xlu1 %85  }
  0x95   :  { %82 = vst.msk [vmem:[#allocation0] sm:$0x1] %vm81_vm13, %v80_v29  }
  0x96   :  { %88 = vst.msk [vmem:[#allocation0] sm:$0x1] %vm87_vm14, %v86_v30  }
  0x97   :  { %94 = vst.msk [vmem:[#allocation0] sm:$0x1] %vm93_vm15, %v92_v24  }
  0x9e   :  { %v97_v31 = vld [vmem:[#allocation0] sm:$0x1] }
  0x9f   :  { %100 = vst [vmem:[%s208_s1] sm:$0x1] %v97_v31 }

// kernel: tfcc_forward.1
= control target key start
LH: loop header
LB: loop body
LE: loop exit
PB: predicated region body
PF: predicated region fallthrough
CT: control target
= control target key end

     0   :  { %s951_s21 = smov 0   ;;  %s1441_s0 = inlined_call_operand.vmem [shape: f32[2,16,128], index: 0, kind: input, shape index: {}]   ;;  %s1442_s1 = inlined_call_operand.vmem [shape: f32[2,3,128,128], index: 1, kind: input, shape index: {}]   ;;  %s1443_s2 = inlined_call_operand.vmem [shape: f32[128,128], index: 2, kind: input, shape index: {}]   ;;  %s1444_s3 = inlined_call_operand.vmem [shape: f32[2,1,128], index: 3, kind: input, shape index: {}]   ;;  %s1445_s4 = inlined_call_operand.vmem [shape: f32[2,1,128], index: 4, kind: input, shape index: {}]   ;;  %s1446_s5 = inlined_call_operand.vmem [shape: f32[2,1,128], index: 5, kind: input, shape index: {}]   ;;  %s1447_s6 = inlined_call_operand.vmem [shape: f32[2,16,128], index: 6, kind: output, shape index: {}]  }
   0x1 LB: > { %s792_s22 = sadd.s32 4294967295, %s913_s21   ;;  %p796_p0 = scmp.ge.s32.totalorder %s913_s21, 1  ;;  %s913_s21 = sphi %s951_s21, %s16_s21  }
   0x2   : > { %p212_p1 = scmp.lt.s32.totalorder %s913_s21, 3 }
   0x4   : > { %p213_p2 = pnand %p796_p0, %p212_p1 }
   0x5   : > { %p968_p3 = scmp.lt.s32.totalorder (!%p213_p2), %s792_s22, 1 }
   0x6   : > { %216 = sbr.rel (%p213_p2) target bundleno = 981 (0x3d5), region = 44 }
   0xb   : > { %v832_v0 = vld [vmem:[%s1442_s1 + $0x178] sm:$0xff]  ;;  %v831_v1 = vld [vmem:[%s1442_s1 + $0x170] sm:$0xff]  ;;  %v915_v5 = vmov 0.0   ;;  %v830_v6 = vld [vmem:[%s1442_s1 + $0x168] sm:$0xff]  ;;  %s1450_s22 = smov (!%p968_p3, %s792_s22), 1 }
   0xc   : > { %v816_v2 = vld [vmem:[%s1442_s1 + $0xf8] sm:$0xff]  ;;  %361 = vmatpush.msra.mxu2 %v832_v0  ;;  %v815_v4 = vld [vmem:[%s1442_s1 + $0xf0] sm:$0xff]  ;;  %252 = vst [vmem:[#allocation2] sm:$0xff] %v915_v5  ;;  %v814_v8 = vld [vmem:[%s1442_s1 + $0xe8] sm:$0xff]  ;;  %s886_s12 = sshll.u32 %s1450_s22, 4 }
   0xd   : > { %296 = vmatpush.msra.mxu0 %v816_v2  ;;  %v276_v3 = vld [vmem:[%s1442_s1 + $0x78] sm:$0xff]  ;;  %v275_v7 = vld [vmem:[%s1442_s1 + $0x70] sm:$0xff]  ;;  %253 = vst [vmem:[#allocation2 + $0x8] sm:$0xff] %v915_v5  ;;  %v274_v9 = vld [vmem:[%s1442_s1 + $0x68] sm:$0xff]  ;;  %s246_s25 = scalar_lea.vmem %s1441_s0, %s886_s12  ;;  %s251_s9 = scalar_lea.vmem %s1447_s6, %s886_s12 }
   0xe   : > { %319 = vmatpush.msra.mxu1 %v276_v3  ;;  %362 = vmatpush.msra.mxu2 %v831_v1  ;;  %254 = vst [vmem:[#allocation2 + $0x10] sm:$0x3] %v915_v5  ;;  %v829_v10 = vld [vmem:[%s1442_s1 + $0x160] sm:$0xff]  ;;  %v828_v13 = vld [vmem:[%s1442_s1 + $0x158] sm:$0xff]  ;;  %v827_v16 = vld [vmem:[%s1442_s1 + $0x150] sm:$0xff] }
   0xf   : > { %297 = vmatpush.msra.mxu0 %v815_v4  ;;  %v813_v11 = vld [vmem:[%s1442_s1 + $0xe0] sm:$0xff]  ;;  %v812_v14 = vld [vmem:[%s1442_s1 + $0xd8] sm:$0xff]  ;;  %v811_v17 = vld [vmem:[%s1442_s1 + $0xd0] sm:$0xff] }
  0x10   : > { %320 = vmatpush.msra.mxu1 %v275_v7  ;;  %363 = vmatpush.msra.mxu2 %v830_v6  ;;  %v273_v12 = vld [vmem:[%s1442_s1 + $0x60] sm:$0xff]  ;;  %v272_v15 = vld [vmem:[%s1442_s1 + $0x58] sm:$0xff]  ;;  %v271_v18 = vld [vmem:[%s1442_s1 + $0x50] sm:$0xff] }
  0x11   : > { %298 = vmatpush.msra.mxu0 %v814_v8  ;;  %v826_v19 = vld [vmem:[%s1442_s1 + $0x148] sm:$0xff]  ;;  %v825_v22 = vld [vmem:[%s1442_s1 + $0x140] sm:$0xff]  ;;  %v824_v24 = vld [vmem:[%s1442_s1 + $0x138] sm:$0xff] }
  0x12   : > { %321 = vmatpush.msra.mxu1 %v274_v9  ;;  %364 = vmatpush.msra.mxu2 %v829_v10  ;;  %v810_v20 = vld [vmem:[%s1442_s1 + $0xc8] sm:$0xff]  ;;  %v809_v23 = vld [vmem:[%s1442_s1 + $0xc0] sm:$0xff]  ;;  %v823_v26 = vld [vmem:[%s1442_s1 + $0x130] sm:$0xff] }
  0x13   : > { %299 = vmatpush.msra.mxu0 %v813_v11  ;;  %v270_v21 = vld [vmem:[%s1442_s1 + $0x48] sm:$0xff]  ;;  %v269_v25 = vld [vmem:[%s1442_s1 + $0x40] sm:$0xff]  ;;  %v808_v27 = vld [vmem:[%s1442_s1 + $0xb8] sm:$0xff] }
  0x14   : > { %322 = vmatpush.msra.mxu1 %v273_v12  ;;  %365 = vmatpush.msra.mxu2 %v828_v13  ;;  %v255_v28 = vld [vmem:[%s246_s25] sm:$0xff]  ;;  %v268_v29 = vld [vmem:[%s1442_s1 + $0x38] sm:$0xff]  ;;  %v807_v30 = vld [vmem:[%s1442_s1 + $0xb0] sm:$0xff] }
  0x15   : > { %300 = vmatpush.msra.mxu0 %v812_v14  ;;  %v256_v31 = vld [vmem:[%s246_s25 + $0x8] sm:$0xff]  ;;  %257 = vst [vmem:[#allocation2 + $0x1] sm:$0xff] %v255_v28  ;;  %v267_v33 = vld [vmem:[%s1442_s1 + $0x30] sm:$0xff]  ;;  %v1072_v35 = vld [vmem:[%s1443_s2 + $0x78] sm:$0xff] }
  0x16   : > { %323 = vmatpush.msra.mxu1 %v272_v15  ;;  %366 = vmatpush.msra.mxu2 %v827_v16  ;;  %v822_v32 = vld [vmem:[%s1442_s1 + $0x128] sm:$0xff]  ;;  %258 = vst [vmem:[#allocation2 + $0x9] sm:$0xff] %v256_v31  ;;  %v821_v37 = vld [vmem:[%s1442_s1 + $0x120] sm:$0xff]  ;;  %v820_v40 = vld [vmem:[%s1442_s1 + $0x118] sm:$0xff] }
  0x17   : > { %301 = vmatpush.msra.mxu0 %v811_v17  ;;  %v806_v34 = vld [vmem:[%s1442_s1 + $0xa8] sm:$0xff]  ;;  %415 = vmatpush.msra.mxu3 %v1072_v35  ;;  %v805_v38 = vld [vmem:[%s1442_s1 + $0xa0] sm:$0xff]  ;;  %v804_v41 = vld [vmem:[%s1442_s1 + $0x98] sm:$0xff] }
  0x18   : > { %324 = vmatpush.msra.mxu1 %v271_v18  ;;  %367 = vmatpush.msra.mxu2 %v826_v19  ;;  %v266_v36 = vld [vmem:[%s1442_s1 + $0x28] sm:$0xff]  ;;  %v265_v39 = vld [vmem:[%s1442_s1 + $0x20] sm:$0xff]  ;;  %v264_v42 = vld [vmem:[%s1442_s1 + $0x18] sm:$0xff] }
  0x19   : > { %302 = vmatpush.msra.mxu0 %v810_v20  ;;  %v819_v43 = vld [vmem:[%s1442_s1 + $0x110] sm:$0xff]  ;;  %v818_v46 = vld [vmem:[%s1442_s1 + $0x108] sm:$0xff]  ;;  %v817_v49 = vld [vmem:[%s1442_s1 + $0x100] sm:$0xff] }
  0x1a   : > { %325 = vmatpush.msra.mxu1 %v270_v21  ;;  %368 = vmatpush.msra.mxu2 %v825_v22  ;;  %v803_v44 = vld [vmem:[%s1442_s1 + $0x90] sm:$0xff]  ;;  %v802_v47 = vld [vmem:[%s1442_s1 + $0x88] sm:$0xff]  ;;  %v801_v50 = vld [vmem:[%s1442_s1 + $0x80] sm:$0xff] }
  0x1b   : > { %303 = vmatpush.msra.mxu0 %v809_v23  ;;  %v263_v45 = vld [vmem:[%s1442_s1 + $0x10] sm:$0xff]  ;;  %v262_v48 = vld [vmem:[%s1442_s1 + $0x8] sm:$0xff]  ;;  %v261_v52 = vld [vmem:[%s1442_s1] sm:$0xff] }
  0x1c   : > { %326 = vmatpush.msra.mxu1 %v269_v25  ;;  %369 = vmatpush.msra.mxu2 %v824_v24  ;;  %v259_v53 = vld [vmem:[#allocation2] sm:$0xff]  ;;  %v1127_v56 = vld [vmem:[%s1443_s2 + $0x70] sm:$0xff]  ;;  %v1134_v57 = vld [vmem:[%s1443_s2 + $0x68] sm:$0xff] }
  0x1d   : > { %304 = vmatpush.msra.mxu0 %v808_v27  ;;  %v342_v51 = vld [vmem:[#allocation2 + $0x2] sm:$0xff]  ;;  %v343_v54 = vld [vmem:[#allocation2 + $0xa] sm:$0xff]  ;;  %416 = vmatpush.msra.mxu3 %v1127_v56  ;;  %v1148_v59 = vld [vmem:[%s1443_s2 + $0x58] sm:$0xff] }
  0x1e   : > { %327 = vmatpush.msra.mxu1 %v268_v29  ;;  %370 = vmatpush.msra.mxu2 %v823_v26  ;;  %v260_v55 = vld [vmem:[#allocation2 + $0x8] sm:$0xff]  ;;  %v1141_v58 = vld [vmem:[%s1443_s2 + $0x60] sm:$0xff]  ;;  %v1154_v60 = vld [vmem:[%s1443_s2 + $0x50] sm:$0xff] }
  0x1f   : > { %305 = vmatpush.msra.mxu0 %v807_v30  ;;  %417 = vmatpush.msra.mxu3 %v1134_v57  ;;  %v1162_v61 = vld [vmem:[%s1443_s2 + $0x48] sm:$0xff]  ;;  %v1169_v62 = vld [vmem:[%s1443_s2 + $0x40] sm:$0xff]  ;;  %v1176_v63 = vld [vmem:[%s1443_s2 + $0x38] sm:$0xff] }
  0x20   : > { %328 = vmatpush.msra.mxu1 %v267_v33  ;;  %371 = vmatpush.msra.mxu2 %v822_v32  ;;  %v1183_v0 = vld [vmem:[%s1443_s2 + $0x30] sm:$0xff]  ;;  %v1190_v1 = vld [vmem:[%s1443_s2 + $0x28] sm:$0xff]  ;;  %v1195_v2 = vld [vmem:[%s1443_s2 + $0x20] sm:$0xff] }
  0x21   : > { %306 = vmatpush.msra.mxu0 %v806_v34  ;;  %418 = vmatpush.msra.mxu3 %v1141_v58  ;;  %v1202_v3 = vld [vmem:[%s1443_s2 + $0x18] sm:$0xff]  ;;  %v1209_v4 = vld [vmem:[%s1443_s2 + $0x10] sm:$0xff]  ;;  %v1216_v5 = vld [vmem:[%s1443_s2 + $0x8] sm:$0xff] }
  0x22   : > { %329 = vmatpush.msra.mxu1 %v266_v36  ;;  %372 = vmatpush.msra.mxu2 %v821_v37  ;;  %v1223_v6 = vld [vmem:[%s1443_s2] sm:$0xff] }
  0x23   : > { %307 = vmatpush.msra.mxu0 %v805_v38  ;;  %419 = vmatpush.msra.mxu3 %v1148_v59  ;;  %v897_v15 = vld [vmem:[%s1444_s3] ss:$0 sm:$0xff] }
  0x24   : > { %330 = vmatpush.msra.mxu1 %v265_v39  ;;  %373 = vmatpush.msra.mxu2 %v820_v40 }
  0x25   : > { %308 = vmatpush.msra.mxu0 %v804_v41  ;;  %420 = vmatpush.msra.mxu3 %v1154_v60  ;;  %v864_v41 = vld [vmem:[%s1442_s1 + $0x278] sm:$0xff] }
  0x26   : > { %331 = vmatpush.msra.mxu1 %v264_v42  ;;  %374 = vmatpush.msra.mxu2 %v819_v43  ;;  %v863_v42 = vld [vmem:[%s1442_s1 + $0x270] sm:$0xff]  ;;  %v862_v43 = vld [vmem:[%s1442_s1 + $0x268] sm:$0xff] }
  0x27   : > { %309 = vmatpush.msra.mxu0 %v803_v44  ;;  %421 = vmatpush.msra.mxu3 %v1162_v61  ;;  %v861_v44 = vld [vmem:[%s1442_s1 + $0x260] sm:$0xff] }
  0x28   : > { %332 = vmatpush.msra.mxu1 %v263_v45  ;;  %375 = vmatpush.msra.mxu2 %v818_v46  ;;  %v848_v45 = vld [vmem:[%s1442_s1 + $0x1f8] sm:$0xff] }
  0x29   : > { %310 = vmatpush.msra.mxu0 %v802_v47  ;;  %422 = vmatpush.msra.mxu3 %v1169_v62  ;;  %v880_v46 = vld [vmem:[%s1442_s1 + $0x2f8] sm:$0xff] }
  0x2a   : > { %333 = vmatpush.msra.mxu1 %v262_v48  ;;  %376 = vmatpush.msra.mxu2 %v817_v49  ;;  %v860_v47 = vld [vmem:[%s1442_s1 + $0x258] sm:$0xff]  ;;  %v847_v48 = vld [vmem:[%s1442_s1 + $0x1f0] sm:$0xff] }
  0x2b   : > { %311 = vmatpush.msra.mxu0 %v801_v50  ;;  %377 = vmatmul.f32.vlgmr.msra.gmra.mxu2 %v342_v51  ;;  %v879_v49 = vld [vmem:[%s1442_s1 + $0x2f0] sm:$0xff]  ;;  %v846_v51 = vld [vmem:[%s1442_s1 + $0x1e8] sm:$0xff] }
  0x2c   : > { %334 = vmatpush.msra.mxu1 %v261_v52  ;;  %312 = vmatmul.f32.vlgmr.msra.gmra.mxu0 %v255_v28  ;;  %v859_v50 = vld [vmem:[%s1442_s1 + $0x250] sm:$0xff]  ;;  %v878_v52 = vld [vmem:[%s1442_s1 + $0x2e8] sm:$0xff] }
  0x2d   : > { %335 = vmatmul.f32.vlgmr.msra.gmra.mxu1 %v259_v53  ;;  %447 = vmatpush.msrb.mxu0 %v1072_v35  ;;  %v858_v53 = vld [vmem:[%s1442_s1 + $0x248] sm:$0xff] }
  0x2e   : > { %423 = vmatpush.msra.mxu3 %v1176_v63  ;;  %534 = vmatpush.msrb.mxu1 %v864_v41  ;;  %v834_v41 = vld [vmem:[%s1442_s1 + $0x188] sm:$0xff] }
  0x2f   : > { %448 = vmatpush.msrb.mxu0 %v1127_v56  ;;  %557 = vmatpush.msrb.mxu2 %v848_v45 }
  0x30   : > { %424 = vmatpush.msra.mxu3 %v1183_v0  ;;  %535 = vmatpush.msrb.mxu1 %v863_v42  ;;  %v866_v42 = vld [vmem:[%s1442_s1 + $0x288] sm:$0xff] }
  0x31   : > { %449 = vmatpush.msrb.mxu0 %v1134_v57  ;;  %558 = vmatpush.msrb.mxu2 %v847_v48 }
  0x32   : > { %425 = vmatpush.msra.mxu3 %v1190_v1  ;;  %536 = vmatpush.msrb.mxu1 %v862_v43  ;;  %v833_v43 = vld [vmem:[%s1442_s1 + $0x180] sm:$0xff] }
  0x33   : > { %380 = vmatmul.f32.gmra.mxu2 %v343_v54  ;;  %450 = vmatpush.msrb.mxu0 %v1141_v58  ;;  %v845_v54 = vld [vmem:[%s1442_s1 + $0x1e0] sm:$0xff] }
  0x34   : > { %315 = vmatmul.f32.gmra.mxu0 %v256_v31  ;;  %426 = vmatpush.msra.mxu3 %v1195_v2 }
  0x35   : > { %338 = vmatmul.f32.gmra.mxu1 %v260_v55  ;;  %451 = vmatpush.msrb.mxu0 %v1148_v59  ;;  %v877_v55 = vld [vmem:[%s1442_s1 + $0x2e0] sm:$0xff] }
  0x36   : > { %427 = vmatpush.msra.mxu3 %v1202_v3  ;;  %537 = vmatpush.msrb.mxu1 %v861_v44  ;;  %v865_v44 = vld [vmem:[%s1442_s1 + $0x280] sm:$0xff] }
  0x37   : > { %452 = vmatpush.msrb.mxu0 %v1154_v60  ;;  %559 = vmatpush.msrb.mxu2 %v846_v51 }
  0x38   : > { %428 = vmatpush.msra.mxu3 %v1209_v4  ;;  %538 = vmatpush.msrb.mxu1 %v860_v47 }
  0x39   : > { %453 = vmatpush.msrb.mxu0 %v1162_v61  ;;  %560 = vmatpush.msrb.mxu2 %v845_v54 }
  0x3a   : > { %429 = vmatpush.msra.mxu3 %v1216_v5  ;;  %539 = vmatpush.msrb.mxu1 %v859_v50 }
  0x3b   : > { %454 = vmatpush.msrb.mxu0 %v1169_v62 }
  0x3c   : > { %430 = vmatpush.msra.mxu3 %v1223_v6  ;;  %540 = vmatpush.msrb.mxu1 %v858_v53 }
  0x3d   : > { %455 = vmatpush.msrb.mxu0 %v1176_v63 }
  0x3e   : > { %599 = vmatpush.msrb.mxu3 %v880_v46 }
  0x3f   : > { %456 = vmatpush.msrb.mxu0 %v1183_v0 }
  0x40   : > { %600 = vmatpush.msrb.mxu3 %v879_v49 }
  0x41   : > { %457 = vmatpush.msrb.mxu0 %v1190_v1 }
  0x42   : > { %601 = vmatpush.msrb.mxu3 %v878_v52 }
  0x43   : > { %458 = vmatpush.msrb.mxu0 %v1195_v2 }
  0x44   : > { %602 = vmatpush.msrb.mxu3 %v877_v55 }
  0x45   : > { %459 = vmatpush.msrb.mxu0 %v1202_v3 }
  0x47   : > { %460 = vmatpush.msrb.mxu0 %v1209_v4 }
  0x49   : > { %461 = vmatpush.msrb.mxu0 %v1216_v5 }
  0x4b   : > { %462 = vmatpush.msrb.mxu0 %v1223_v6 }
  0x4d   : > { %654 = vmatpush.msra.mxu0 %v1072_v35 }
  0x4f   : > { %655 = vmatpush.msra.mxu0 %v1127_v56 }
  0x51   : > { %656 = vmatpush.msra.mxu0 %v1134_v57 }
  0x53   : > { %657 = vmatpush.msra.mxu0 %v1141_v58 }
  0x55   : > { %658 = vmatpush.msra.mxu0 %v1148_v59 }
  0x57   : > { %659 = vmatpush.msra.mxu0 %v1154_v60 }
  0x59   : > { %660 = vmatpush.msra.mxu0 %v1162_v61 }
  0x5b   : > { %661 = vmatpush.msra.mxu0 %v1169_v62 }
  0x5d   : > { %662 = vmatpush.msra.mxu0 %v1176_v63 }
  0x5f   : > { %663 = vmatpush.msra.mxu0 %v1183_v0 }
  0x61   : > { %664 = vmatpush.msra.mxu0 %v1190_v1 }
  0x63   : > { %665 = vmatpush.msra.mxu0 %v1195_v2 }
  0x65   : > { %666 = vmatpush.msra.mxu0 %v1202_v3 }
  0x67   : > { %667 = vmatpush.msra.mxu0 %v1209_v4 }
  0x69   : > { %668 = vmatpush.msra.mxu0 %v1216_v5 }
  0x6b   : > { %669 = vmatpush.msra.mxu0 %v1223_v6 }
  0xa9   : > { %v313_v7 = vpop.f32.mrf.mxu0 }
  0xaa   : > { %v336_v8 = vpop.f32.mrf.mxu1 }
  0xab   : > { %v337_v10 = vadd.f32 %v336_v8, %v313_v7  ;;  %v857_v7 = vld [vmem:[%s1442_s1 + $0x240] sm:$0xff]  ;;  %v844_v8 = vld [vmem:[%s1442_s1 + $0x1d8] sm:$0xff] }
  0xac   : > { %541 = vmatpush.msrb.mxu1 %v857_v7  ;;  %561 = vmatpush.msrb.mxu2 %v844_v8 }
  0xae   : > { %v378_v9 = vpop.f32.mrf.mxu2 }
  0xaf   : > { %v384_v14 = vadd.f32 %v378_v9, %v337_v10  ;;  %v876_v9 = vld [vmem:[%s1442_s1 + $0x2d8] sm:$0xff] }
  0xb0   : > { %v856_v10 = vld [vmem:[%s1442_s1 + $0x238] sm:$0xff]  ;;  %603 = vmatpush.msrb.mxu3 %v876_v9 }
  0xb1   : > { %v316_v11 = vpop.f32.mrf.mxu0  ;;  %v390_v18 = vadd.f32 %v897_v15, %v384_v14  ;;  %542 = vmatpush.msrb.mxu1 %v856_v10  ;;  %v842_v14 = vld [vmem:[%s1442_s1 + $0x1c8] sm:$0xff] }
  0xb2   : > { %v339_v12 = vpop.f32.mrf.mxu1 }
  0xb3   : > { %v340_v13 = vadd.f32 %v339_v12, %v316_v11  ;;  %v843_v11 = vld [vmem:[%s1442_s1 + $0x1d0] sm:$0xff] }
  0xb4   : > { %v875_v12 = vld [vmem:[%s1442_s1 + $0x2d0] sm:$0xff]  ;;  %562 = vmatpush.msrb.mxu2 %v843_v11 }
  0xb5   : > { %604 = vmatpush.msrb.mxu3 %v875_v12 }
  0xb6   : > { %v381_v16 = vpop.f32.mrf.mxu2  ;;  %563 = vmatpush.msrb.mxu2 %v842_v14 }
  0xb7   : > { %v385_v17 = vadd.f32 %v381_v16, %v340_v13  ;;  %v855_v13 = vld [vmem:[%s1442_s1 + $0x230] sm:$0xff]  ;;  %v854_v16 = vld [vmem:[%s1442_s1 + $0x228] sm:$0xff] }
  0xb8   : > { %543 = vmatpush.msrb.mxu1 %v855_v13 }
  0xb9   : > { %v391_v19 = vadd.f32 %v897_v15, %v385_v17  ;;  %v874_v15 = vld [vmem:[%s1442_s1 + $0x2c8] sm:$0xff]  ;;  %v841_v17 = vld [vmem:[%s1442_s1 + $0x1c0] sm:$0xff] }
  0xba   : > { %605 = vmatpush.msrb.mxu3 %v874_v15  ;;  %544 = vmatpush.msrb.mxu1 %v854_v16 }
  0xbb   : > { %v392_v20 = vadd.f32 %v391_v19, %v390_v18  ;;  %564 = vmatpush.msrb.mxu2 %v841_v17 }
  0xbd   : > { %v393_v21 = vrot.slane %v392_v20, 4 }
  0xbf   : > { %v394_v22 = vadd.f32 %v393_v21, %v392_v20  ;;  %v840_v20 = vld [vmem:[%s1442_s1 + $0x1b8] sm:$0xff] }
  0xc0   : > { %v872_v21 = vld [vmem:[%s1442_s1 + $0x2b8] sm:$0xff]  ;;  %565 = vmatpush.msrb.mxu2 %v840_v20 }
  0xc1   : > { %v395_v23 = vrot.slane %v394_v22, 2 }
  0xc3   : > { %v396_v24 = vadd.f32 %v395_v23, %v394_v22  ;;  %v852_v22 = vld [vmem:[%s1442_s1 + $0x218] sm:$0xff]  ;;  %v839_v23 = vld [vmem:[%s1442_s1 + $0x1b0] sm:$0xff] }
  0xc4   : > { %566 = vmatpush.msrb.mxu2 %v839_v23 }
  0xc5   : > { %v397_v25 = vrot.slane %v396_v24, 1 }
  0xc7   : > { %v398_v26 = vadd.f32 %v397_v25, %v396_v24  ;;  %v871_v24 = vld [vmem:[%s1442_s1 + $0x2b0] sm:$0xff] }
  0xc8   : > { %v851_v25 = vld [vmem:[%s1442_s1 + $0x210] sm:$0xff] }
  0xc9   : > { %431 = vmatmul.f32.vlgmr.msra.gmra.mxu3 %v398_v26  ;;  %v838_v26 = vld [vmem:[%s1442_s1 + $0x1a8] sm:$0xff] }
  0xca   : > { %567 = vmatpush.msrb.mxu2 %v838_v26 }
 0x14c   : > { %v432_v27 = vpop.f32.mrf.mxu3 }
 0x14d   : > { %v435_v28 = vperm.slane %v432_v27, 0  ;;  %v870_v27 = vld [vmem:[%s1442_s1 + $0x2a8] sm:$0xff] }
 0x14f   : > { %v1248_v29 = vsub.f32 %v390_v18, %v435_v28  ;;  %v1250_v30 = vsub.f32 %v391_v19, %v435_v28  ;;  %v873_v18 = vld [vmem:[%s1442_s1 + $0x2c0] sm:$0xff]  ;;  %v850_v28 = vld [vmem:[%s1442_s1 + $0x208] sm:$0xff] }
 0x150   : > { %v853_v19 = vld [vmem:[%s1442_s1 + $0x220] sm:$0xff]  ;;  %606 = vmatpush.msrb.mxu3 %v873_v18 }
 0x151   : > { %v438_v31 = vmul.f32 %v1248_v29, %v1248_v29  ;;  %v439_v32 = vmul.f32 %v1250_v30, %v1250_v30  ;;  %545 = vmatpush.msrb.mxu1 %v853_v19 }
 0x152   : > { %607 = vmatpush.msrb.mxu3 %v872_v21 }
 0x153   : > { %v440_v33 = vadd.f32 %v439_v32, %v438_v31  ;;  %546 = vmatpush.msrb.mxu1 %v852_v22  ;;  %v837_v31 = vld [vmem:[%s1442_s1 + $0x1a0] sm:$0xff] }
 0x154   : > { %608 = vmatpush.msrb.mxu3 %v871_v24  ;;  %v869_v32 = vld [vmem:[%s1442_s1 + $0x2a0] sm:$0xff]  ;;  %568 = vmatpush.msrb.mxu2 %v837_v31 }
 0x155   : > { %v441_v34 = vrot.slane %v440_v33, 4  ;;  %547 = vmatpush.msrb.mxu1 %v851_v25 }
 0x156   : > { %609 = vmatpush.msrb.mxu3 %v870_v27 }
 0x157   : > { %v442_v36 = vadd.f32 %v441_v34, %v440_v33  ;;  %548 = vmatpush.msrb.mxu1 %v850_v28  ;;  %v849_v33 = vld [vmem:[%s1442_s1 + $0x200] sm:$0xff] }
 0x158   : > { %610 = vmatpush.msrb.mxu3 %v869_v32 }
 0x159   : > { %v443_v37 = vrot.slane %v442_v36, 2  ;;  %549 = vmatpush.msrb.mxu1 %v849_v33 }
 0x15b   : > { %v444_v38 = vadd.f32 %v443_v37, %v442_v36  ;;  %v836_v36 = vld [vmem:[%s1442_s1 + $0x198] sm:$0xff]  ;;  %686 = vmatpush.msra.mxu1 %v1072_v35 }
 0x15c   : > { %v868_v37 = vld [vmem:[%s1442_s1 + $0x298] sm:$0xff]  ;;  %569 = vmatpush.msrb.mxu2 %v836_v36 }
 0x15d   : > { %v445_v39 = vrot.slane %v444_v38, 1  ;;  %611 = vmatpush.msrb.mxu3 %v868_v37  ;;  %687 = vmatpush.msra.mxu1 %v1127_v56 }
 0x15f   : > { %v446_v40 = vadd.f32 %v445_v39, %v444_v38  ;;  %v835_v38 = vld [vmem:[%s1442_s1 + $0x190] sm:$0xff]  ;;  %688 = vmatpush.msra.mxu1 %v1134_v57 }
 0x160   : > { %570 = vmatpush.msrb.mxu2 %v835_v38 }
 0x161   : > { %463 = vmatmul.f32.vlgmr.msrb.gmra.mxu0 %v446_v40  ;;  %v867_v40 = vld [vmem:[%s1442_s1 + $0x290] sm:$0xff]  ;;  %689 = vmatpush.msra.mxu1 %v1141_v58 }
 0x162   : > { %612 = vmatpush.msrb.mxu3 %v867_v40  ;;  %571 = vmatpush.msrb.mxu2 %v834_v41 }
 0x163   : > { %690 = vmatpush.msra.mxu1 %v1148_v59  ;;  %v898_v59 = vld [vmem:[%s1445_s4] ss:$0 sm:$0xff] }
 0x164   : > { %613 = vmatpush.msrb.mxu3 %v866_v42  ;;  %572 = vmatpush.msrb.mxu2 %v833_v43 }
 0x165   : > { %691 = vmatpush.msra.mxu1 %v1154_v60 }
 0x166   : > { %614 = vmatpush.msrb.mxu3 %v865_v44 }
 0x167   : > { %692 = vmatpush.msra.mxu1 %v1162_v61 }
 0x169   : > { %693 = vmatpush.msra.mxu1 %v1169_v62  ;;  %v899_v62 = vld [vmem:[%s1446_s5] ss:$0 sm:$0xff] }
 0x16b   : > { %694 = vmatpush.msra.mxu1 %v1176_v63 }
 0x16d   : > { %695 = vmatpush.msra.mxu1 %v1183_v0 }
 0x16f   : > { %696 = vmatpush.msra.mxu1 %v1190_v1 }
 0x171   : > { %697 = vmatpush.msra.mxu1 %v1195_v2 }
 0x173   : > { %698 = vmatpush.msra.mxu1 %v1202_v3 }
 0x175   : > { %699 = vmatpush.msra.mxu1 %v1209_v4 }
 0x177   : > { %700 = vmatpush.msra.mxu1 %v1216_v5 }
 0x179   : > { %701 = vmatpush.msra.mxu1 %v1223_v6  ;;  %v900_v6 = vld [vmem:[%s1444_s3 + $0x1] ss:$0 sm:$0xff] }
 0x1de   : > { %v464_v34 = vpop.f32.mrf.mxu0 }
 0x1df   : > { %v465_v39 = vadd.f32 1e-05, %v464_v34 }
 0x1e1   : > { %903 = vrsqrt.f32 %v465_v39  ;;  %vm473_vm1 = vweird.f32 %v465_v39 }
 0x1e7   : > { %v904_v35 = vpop.eup %903 }
 0x1e8   : > { %v468_v45 = vmul.f32 %v904_v35, %v465_v39  ;;  %vm474_vm0 = vweird.f32 %v904_v35 }
 0x1e9   : > { %vm475_vm2 = vmor %vm473_vm1, %vm474_vm0 }
 0x1ea   : > { %v469_v46 = vmul.f32 %v904_v35, %v468_v45  ;;  %v901_v45 = vld [vmem:[%s1445_s4 + $0x1] ss:$0 sm:$0xff] }
 0x1ec   : > { %v470_v47 = vmul.f32 0.5, %v469_v46 }
 0x1ee   : > { %v471_v48 = vsub.f32 1.5, %v470_v47 }
 0x1f0   : > { %v472_v56 = vmul.f32 %v904_v35, %v471_v48  ;;  %v902_v48 = vld [vmem:[%s1446_s5 + $0x1] ss:$0 sm:$0xff] }
 0x1f2   : > { %v476_v57 = vsel %vm475_vm2, %v904_v35, %v472_v56 }
 0x1f3   : > { %v477_v58 = vperm.slane %v476_v57, 0 }
 0x1f5   : > { %v478_v60 = vmul.f32 %v477_v58, %v1248_v29  ;;  %v479_v61 = vmul.f32 %v477_v58, %v1250_v30 }
 0x1f7   : > { %v484_v63 = vmul.f32 %v898_v59, %v478_v60  ;;  %v485_v49 = vmul.f32 %v898_v59, %v479_v61 }
 0x1f9   : > { %v490_v0 = vadd.f32 %v899_v62, %v484_v63  ;;  %v491_v50 = vadd.f32 %v899_v62, %v485_v49 }
 0x1fb   : > { %v492_v51 = vmax.f32 %v490_v0, 0.0  ;;  %v493_v1 = vmax.f32 %v491_v50, 0.0 }
 0x1fd   : > { %494 = vst [vmem:[#allocation2 + $0x1] sm:$0xff] %v492_v51  ;;  %550 = vmatmul.f32.vlgmr.msrb.gmra.mxu1 %v492_v51 }
 0x1fe   : > { %495 = vst [vmem:[#allocation2 + $0x9] sm:$0xff] %v493_v1 }
 0x204   : > { %v496_v29 = vld [vmem:[#allocation2] sm:$0xff] }
 0x205   : > { %573 = vmatmul.f32.vlgmr.msrb.gmra.mxu2 %v496_v29  ;;  %v580_v2 = vld [vmem:[#allocation2 + $0x2] sm:$0xff]  ;;  %553 = vmatmul.f32.gmra.mxu1 %v493_v1  ;;  %v581_v3 = vld [vmem:[#allocation2 + $0xa] sm:$0xff] }
 0x206   : > { %615 = vmatmul.f32.vlgmr.msrb.gmra.mxu3 %v580_v2  ;;  %v497_v30 = vld [vmem:[#allocation2 + $0x8] sm:$0xff] }
 0x20d   : > { %576 = vmatmul.f32.gmra.mxu2 %v497_v30 }
 0x20e   : > { %618 = vmatmul.f32.gmra.mxu3 %v581_v3 }
 0x27a   : > { %v551_v52 = vpop.f32.mrf.mxu1 }
 0x282   : > { %v554_v55 = vpop.f32.mrf.mxu1 }
 0x288   : > { %v574_v4 = vpop.f32.mrf.mxu2 }
 0x289   : > { %v616_v53 = vpop.f32.mrf.mxu3  ;;  %v575_v54 = vadd.f32 %v574_v4, %v551_v52 }
 0x28b   : > { %v622_v7 = vadd.f32 %v616_v53, %v575_v54 }
 0x28d   : > { %v629_v11 = vadd.f32 %v900_v6, %v622_v7 }
 0x290   : > { %v577_v5 = vpop.f32.mrf.mxu2 }
 0x291   : > { %v578_v8 = vadd.f32 %v577_v5, %v554_v55  ;;  %v619_v9 = vpop.f32.mrf.mxu3 }
 0x293   : > { %v623_v10 = vadd.f32 %v619_v9, %v578_v8 }
 0x295   : > { %v630_v12 = vadd.f32 %v900_v6, %v623_v10 }
 0x297   : > { %v631_v13 = vadd.f32 %v630_v12, %v629_v11 }
 0x299   : > { %v632_v14 = vrot.slane %v631_v13, 4 }
 0x29b   : > { %v633_v15 = vadd.f32 %v632_v14, %v631_v13 }
 0x29d   : > { %v634_v16 = vrot.slane %v633_v15, 2 }
 0x29f   : > { %v635_v17 = vadd.f32 %v634_v16, %v633_v15 }
 0x2a1   : > { %v636_v18 = vrot.slane %v635_v17, 1 }
 0x2a3   : > { %v637_v19 = vadd.f32 %v636_v18, %v635_v17 }
 0x2a5   : > { %670 = vmatmul.f32.vlgmr.msra.gmra.mxu0 %v637_v19 }
 0x322   : > { %v671_v20 = vpop.f32.mrf.mxu0 }
 0x323   : > { %v674_v21 = vperm.slane %v671_v20, 0 }
 0x325   : > { %v675_v22 = vsub.f32 %v629_v11, %v674_v21  ;;  %v676_v23 = vsub.f32 %v630_v12, %v674_v21 }
 0x327   : > { %v677_v24 = vmul.f32 %v675_v22, %v675_v22  ;;  %v678_v25 = vmul.f32 %v676_v23, %v676_v23 }
 0x329   : > { %v679_v26 = vadd.f32 %v678_v25, %v677_v24 }
 0x32b   : > { %v680_v27 = vrot.slane %v679_v26, 4 }
 0x32d   : > { %v681_v28 = vadd.f32 %v680_v27, %v679_v26 }
 0x32f   : > { %v682_v31 = vrot.slane %v681_v28, 2 }
 0x331   : > { %v683_v32 = vadd.f32 %v682_v31, %v681_v28 }
 0x333   : > { %v684_v33 = vrot.slane %v683_v32, 1 }
 0x335   : > { %v685_v34 = vadd.f32 %v684_v33, %v683_v32 }
 0x337   : > { %702 = vmatmul.f32.vlgmr.msra.gmra.mxu1 %v685_v34 }
 0x3b4   : > { %v703_v36 = vpop.f32.mrf.mxu1 }
 0x3b5   : > { %v704_v37 = vadd.f32 1e-05, %v703_v36 }
 0x3b7   : > { %905 = vrsqrt.f32 %v704_v37  ;;  %vm712_vm4 = vweird.f32 %v704_v37 }
 0x3bd   : > { %v906_v38 = vpop.eup %905 }
 0x3be   : > { %v707_v39 = vmul.f32 %v906_v38, %v704_v37  ;;  %vm713_vm3 = vweird.f32 %v906_v38 }
 0x3bf   : > { %vm714_vm5 = vmor %vm712_vm4, %vm713_vm3 }
 0x3c0   : > { %v708_v40 = vmul.f32 %v906_v38, %v707_v39 }
 0x3c2   : > { %v709_v41 = vmul.f32 0.5, %v708_v40 }
 0x3c4   : > { %v710_v42 = vsub.f32 1.5, %v709_v41 }
 0x3c6   : > { %v711_v43 = vmul.f32 %v906_v38, %v710_v42 }
 0x3c8   : > { %v715_v44 = vsel %vm714_vm5, %v906_v38, %v711_v43 }
 0x3c9   : > { %v716_v35 = vperm.slane %v715_v44, 0 }
 0x3cb   : > { %v717_v46 = vmul.f32 %v716_v35, %v675_v22  ;;  %v718_v47 = vmul.f32 %v716_v35, %v676_v23 }
 0x3cd   : > { %v724_v56 = vmul.f32 %v901_v45, %v717_v46  ;;  %v725_v57 = vmul.f32 %v901_v45, %v718_v47 }
 0x3cf   : > { %v731_v58 = vadd.f32 %v902_v48, %v724_v56  ;;  %v732_v59 = vadd.f32 %v902_v48, %v725_v57 }
 0x3d1   : > { %v733_v60 = vmax.f32 %v731_v58, 0.0  ;;  %v734_v61 = vmax.f32 %v732_v59, 0.0 }
 0x3d3   : > { %735 = vst [vmem:[%s251_s9] sm:$0xff] %v733_v60 }
 0x3d4   : > { %736 = vst [vmem:[%s251_s9 + $0x8] sm:$0xff] %v734_v61 }
 0x3d5 PF: > { %s16_s21 = sadd.s32 1, %s913_s21  }
 0x3d6   : > { %p13_p4 = scmp.ge.s32.totalorder %s16_s21, 4  }
 0x3d8   :  { %15 = sbr.rel (!%p13_p4) target bundleno = 1 (0x1), region = 82 }

</bundles_post_ra>
